<compile_context>
chip_gen: v6e
topology: v6e:2x2x1
jax: 0.10.0
libtpu: 0.0.40
codegen_flags: <defaults>
</compile_context>

<pallas_src>
import jax
import jax.numpy as jnp
from jax.experimental import pallas as pl
from jax.experimental.pallas import tpu as pltpu


def _round_up(n, m):
    return ((n + m - 1) // m) * m


def _cdiv(a, b):
    return (a + b - 1) // b


def mlp_embedding_kernel(x_ref, w1_ref, b1_ref, w2_ref, b2_ref, o_ref):
    # Layer 1: Linear(input_dim -> 128) + ReLU.  f32 accumulation on MXU.
    h = jnp.dot(x_ref[...], w1_ref[...], preferred_element_type=jnp.float32)
    h = jnp.maximum(h + b1_ref[...], 0.0)

    # Layer 2: Linear(128 -> bottleneck).
    y = jnp.dot(h, w2_ref[...], preferred_element_type=jnp.float32) + b2_ref[...]

    # F.normalize(y, dim=1) == y * rsqrt(max(||y||^2, eps^2)), eps = 1e-12.
    ssq = jnp.sum(y * y, axis=1, keepdims=True)
    inv = jax.lax.rsqrt(jnp.maximum(ssq, 1e-24))
    o_ref[...] = y * inv


def mlp_embedding(x, w1, b1, w2, b2, *, tile_b=2048):
    """Forward of MLPEmbedding (encode_layers=2).

    x : (B, ...)          flattened to (B, input_dim), matching torch .view(B, -1)
    w1: (input_dim, 128)  pre-transposed Linear weight (in_features, out_features)
    b1: (128,)
    w2: (128, bottleneck)
    b2: (bottleneck,)
    Returns (B, bottleneck) f32, L2-normalized per row.
    """
    B = x.shape[0]
    x2d = x.reshape(B, -1)                    # cheap reshape, fuses under jit
    D = x2d.shape[1]
    H = w1.shape[1]
    N = w2.shape[1]

    w1 = jnp.asarray(w1, jnp.float32)
    b1 = jnp.asarray(b1, jnp.float32).reshape(1, H)
    w2 = jnp.asarray(w2, jnp.float32)
    b2 = jnp.asarray(b2, jnp.float32).reshape(1, N)

    # Batch tile: big enough to amortize per-step pipeline overhead, small
    # enough to keep the double-buffered x tiles well inside VMEM.
    tile_b = max(8, min(tile_b, _round_up(B, 8)))
    # v7x has 2 TensorCores: keep >= 2 grid steps when B is large enough so the
    # "parallel" batch axis actually shards across both cores.
    if _cdiv(B, tile_b) < 2 and B >= 256:
        tile_b = _round_up(_cdiv(B, 2), 8)
    grid = (_cdiv(B, tile_b),)

    # VMEM budget (internal lane-padded widths), with 2x headroom, capped at
    # 48 MiB so we never request the full 64 MiB physical VMEM of a v7x TC.
    D_l = _round_up(D, 128)
    N_l = _round_up(N, 128)
    vmem_est = (2 * tile_b * D_l * 4            # x tiles, f32, double-buffered
                + 2 * tile_b * N_l * 4          # out tiles, f32, double-buffered
                + 2 * (D_l * H * 4 + H * 4)     # w1 + b1 (resident)
                + 2 * (H * N_l * 4 + N_l * 4))  # w2 + b2 (resident)
    vmem_limit = int(min(max(2 * vmem_est, 32 << 20), 48 << 20))

    itemsize = jnp.dtype(x2d.dtype).itemsize
    cost = pl.CostEstimate(
        flops=2 * B * (D * H + H * N),
        transcendentals=B,
        bytes_accessed=(B * D * itemsize        # x streamed once, native dtype
                        + D * H * 4 + H * 4     # weights/biases read once
                        + H * N * 4 + N * 4
                        + B * N * 4),           # output at its real width
    )

    return pl.pallas_call(
        mlp_embedding_kernel,
        out_shape=jax.ShapeDtypeStruct((B, N), jnp.float32),
        grid_spec=pltpu.PrefetchScalarGridSpec(
            num_scalar_prefetch=0,
            grid=grid,
            in_specs=[
                # x: batch-tiled; last block dim == full array dim (legal even
                # when D is not a multiple of 128 -- Mosaic lane-pads internally).
                pl.BlockSpec((tile_b, D), lambda i: (i, 0)),
                pl.BlockSpec((D, H), lambda i: (0, 0)),   # w1: resident
                pl.BlockSpec((1, H), lambda i: (0, 0)),   # b1: resident
                pl.BlockSpec((H, N), lambda i: (0, 0)),   # w2: resident
                pl.BlockSpec((1, N), lambda i: (0, 0)),   # b2: resident
            ],
            # Output at its real (B, N) width: masked stores are cheaper than
            # 4x-inflated padded writeback + a post-kernel slice copy.
            out_specs=pl.BlockSpec((tile_b, N), lambda i: (i, 0)),
        ),
        compiler_params=pltpu.CompilerParams(
            dimension_semantics=("parallel",),   # shard batch tiles across TCs
            vmem_limit_bytes=vmem_limit,
        ),
        cost_estimate=cost,
    )(x2d, w1, b1, w2, b2)


def init_params(key, input_dim, hidden_dim, bottleneck_dim):
    """Deterministic init mimicking nn.Linear default (uniform in +-1/sqrt(fan_in)).
    Weights are stored transposed: (in_features, out_features)."""
    k1, k2, k3, k4 = jax.random.split(key, 4)
    lim1 = 1.0 / float(jnp.sqrt(jnp.float32(input_dim)))
    lim2 = 1.0 / float(jnp.sqrt(jnp.float32(hidden_dim)))
    w1 = jax.random.uniform(k1, (input_dim, hidden_dim), jnp.float32, -lim1, lim1)
    b1 = jax.random.uniform(k2, (hidden_dim,), jnp.float32, -lim1, lim1)
    w2 = jax.random.uniform(k3, (hidden_dim, bottleneck_dim), jnp.float32, -lim2, lim2)
    b2 = jax.random.uniform(k4, (bottleneck_dim,), jnp.float32, -lim2, lim2)
    return w1, b1, w2, b2


def reference(x, w1, b1, w2, b2):
    B = x.shape[0]
    x2d = x.reshape(B, -1).astype(jnp.float32)
    h = jnp.maximum(x2d @ w1 + b1.reshape(1, -1), 0.0)
    y = h @ w2 + b2.reshape(1, -1)
    n = jnp.maximum(jnp.linalg.norm(y, axis=1, keepdims=True), 1e-12)
    return y / n


if __name__ == "__main__":
    # Small shapes consistent with the module: input_dim=726 (= 3*11*22,
    # deliberately not a multiple of 128 to exercise the unaligned-D path),
    # hidden=128, bottleneck_dim=32, batch=8.
    B, C, Hs, Ws = 8, 3, 11, 22
    input_dim = C * Hs * Ws              # 726
    hidden_dim = 128
    bottleneck_dim = 32

    key = jax.random.PRNGKey(0)
    kx, kp = jax.random.split(key)
    x = jax.random.normal(kx, (B, C, Hs, Ws), jnp.float32)
    w1, b1, w2, b2 = init_params(kp, input_dim, hidden_dim, bottleneck_dim)

    fwd = jax.jit(mlp_embedding)
    out = jax.block_until_ready(fwd(x, w1, b1, w2, b2))

    ref = reference(x, w1, b1, w2, b2)
    assert out.shape == (B, bottleneck_dim)
    # Everything travels f32 now; tolerance only covers MXU pass-count drift.
    assert jnp.allclose(out, ref, atol=2e-2, rtol=2e-2), float(
        jnp.max(jnp.abs(out - ref)))

    print("KERNEL_OK")
</pallas_src>

<mosaic_0001>
module attributes {stable_mosaic.version = 11 : i64} {
  func.func @mlp_embedding_kernel(%arg0: i32, %arg1: memref<8x726xf32, #tpu.memory_space<vmem>>, %arg2: memref<726x128xf32, #tpu.memory_space<vmem>>, %arg3: memref<1x128xf32, #tpu.memory_space<vmem>>, %arg4: memref<128x32xf32, #tpu.memory_space<vmem>>, %arg5: memref<1x32xf32, #tpu.memory_space<vmem>>, %arg6: memref<8x32xf32, #tpu.memory_space<vmem>>) attributes {dimension_semantics = [#tpu.dimension_semantics<parallel>], iteration_bounds = array<i64: 1>, scalar_prefetch = 0 : i64, scratch_operands = 0 : i64, tpu.core_type = #tpu.core_type<tc>, window_params = [{transform_indices = @transform_0, window_bounds = array<i64: 8, 726>}, {pipeline_mode = #tpu.pipeline_mode<synchronous>, transform_indices = @transform_1, window_bounds = array<i64: 726, 128>}, {pipeline_mode = #tpu.pipeline_mode<synchronous>, transform_indices = @transform_2, window_bounds = array<i64: 1, 128>}, {pipeline_mode = #tpu.pipeline_mode<synchronous>, transform_indices = @transform_3, window_bounds = array<i64: 128, 32>}, {pipeline_mode = #tpu.pipeline_mode<synchronous>, transform_indices = @transform_4, window_bounds = array<i64: 1, 32>}, {transform_indices = @transform_5, window_bounds = array<i64: 8, 32>}]} {
    %c0 = arith.constant 0 : index
    %c0_0 = arith.constant 0 : index
    %0 = vector.load %arg1[%c0, %c0_0] : memref<8x726xf32, #tpu.memory_space<vmem>>, vector<8x726xf32>
    %c0_1 = arith.constant 0 : index
    %c0_2 = arith.constant 0 : index
    %1 = vector.load %arg2[%c0_1, %c0_2] : memref<726x128xf32, #tpu.memory_space<vmem>>, vector<726x128xf32>
    %cst = arith.constant dense<0.000000e+00> : vector<8x128xf32>
    %2 = tpu.matmul %0, %1, %cst {dimension_numbers = #tpu.dot_dimension_numbers<[1], [0], [0], [1], [0, 0, 1, 1], [], []>} : vector<8x726xf32>, vector<726x128xf32>, vector<8x128xf32> -> vector<8x128xf32>
    %c0_3 = arith.constant 0 : index
    %c0_4 = arith.constant 0 : index
    %3 = vector.load %arg3[%c0_3, %c0_4] : memref<1x128xf32, #tpu.memory_space<vmem>>, vector<1x128xf32>
    %4 = vector.broadcast %3 : vector<1x128xf32> to vector<8x128xf32>
    %5 = arith.addf %2, %4 : vector<8x128xf32>
    %cst_5 = arith.constant 0.000000e+00 : f32
    %6 = vector.broadcast %cst_5 : f32 to vector<8x128xf32>
    %7 = arith.maximumf %5, %6 : vector<8x128xf32>
    %c0_6 = arith.constant 0 : index
    %c0_7 = arith.constant 0 : index
    %8 = vector.load %arg4[%c0_6, %c0_7] : memref<128x32xf32, #tpu.memory_space<vmem>>, vector<128x32xf32>
    %cst_8 = arith.constant dense<0.000000e+00> : vector<8x32xf32>
    %9 = tpu.matmul %7, %8, %cst_8 {dimension_numbers = #tpu.dot_dimension_numbers<[1], [0], [0], [1], [0, 0, 1, 1], [], []>} : vector<8x128xf32>, vector<128x32xf32>, vector<8x32xf32> -> vector<8x32xf32>
    %c0_9 = arith.constant 0 : index
    %c0_10 = arith.constant 0 : index
    %10 = vector.load %arg5[%c0_9, %c0_10] : memref<1x32xf32, #tpu.memory_space<vmem>>, vector<1x32xf32>
    %11 = vector.broadcast %10 : vector<1x32xf32> to vector<8x32xf32>
    %12 = arith.addf %9, %11 : vector<8x32xf32>
    %13 = arith.mulf %12, %12 : vector<8x32xf32>
    %cst_11 = arith.constant dense<0.000000e+00> : vector<8xf32>
    %14 = vector.multi_reduction <add>, %13, %cst_11 [1] : vector<8x32xf32> to vector<8xf32>
    %15 = vector.shape_cast %14 : vector<8xf32> to vector<8x1xf32>
    %cst_12 = arith.constant 1.000000e-24 : f32
    %16 = vector.broadcast %cst_12 : f32 to vector<8x1xf32>
    %17 = arith.maximumf %15, %16 : vector<8x1xf32>
    %18 = math.rsqrt %17 : vector<8x1xf32>
    %19 = vector.broadcast %18 : vector<8x1xf32> to vector<8x32xf32>
    %20 = arith.mulf %12, %19 : vector<8x32xf32>
    %c0_13 = arith.constant 0 : index
    %c0_14 = arith.constant 0 : index
    %21 = vector.load %arg6[%c0_13, %c0_14] : memref<8x32xf32, #tpu.memory_space<vmem>>, vector<8x32xf32>
    tpu.vector_store %arg6[%c0_13, %c0_14], %20 {strides = array<i32>} : memref<8x32xf32, #tpu.memory_space<vmem>>, vector<8x32xf32>,
    return
  }
  func.func @transform_0(%arg0: i32) -> (i32, i32) {
    %c0_i32 = arith.constant 0 : i32
    %c0_i32_0 = arith.constant 0 : i32
    return %arg0, %c0_i32 : i32, i32
  }
  func.func @transform_1(%arg0: i32) -> (i32, i32) {
    %c0_i32 = arith.constant 0 : i32
    %c0_i32_0 = arith.constant 0 : i32
    %c0_i32_1 = arith.constant 0 : i32
    return %c0_i32, %c0_i32_0 : i32, i32
  }
  func.func @transform_2(%arg0: i32) -> (i32, i32) {
    %c0_i32 = arith.constant 0 : i32
    %c0_i32_0 = arith.constant 0 : i32
    %c0_i32_1 = arith.constant 0 : i32
    return %c0_i32, %c0_i32_0 : i32, i32
  }
  func.func @transform_3(%arg0: i32) -> (i32, i32) {
    %c0_i32 = arith.constant 0 : i32
    %c0_i32_0 = arith.constant 0 : i32
    %c0_i32_1 = arith.constant 0 : i32
    return %c0_i32, %c0_i32_0 : i32, i32
  }
  func.func @transform_4(%arg0: i32) -> (i32, i32) {
    %c0_i32 = arith.constant 0 : i32
    %c0_i32_0 = arith.constant 0 : i32
    %c0_i32_1 = arith.constant 0 : i32
    return %c0_i32, %c0_i32_0 : i32, i32
  }
  func.func @transform_5(%arg0: i32) -> (i32, i32) {
    %c0_i32 = arith.constant 0 : i32
    %c0_i32_0 = arith.constant 0 : i32
    return %arg0, %c0_i32 : i32, i32
  }
}

</mosaic_0001>

<bundles_post_ra>
// kernel: mlp_embedding.1
= control target key start
LH: loop header
LB: loop body
LE: loop exit
PB: predicated region body
PF: predicated region fallthrough
CT: control target
= control target key end

     0   :  { %s1038_s0 = inlined_call_operand.vmem [shape: f32[8,726], index: 0, kind: input, shape index: {}]   ;;  %s1039_s1 = inlined_call_operand.vmem [shape: f32[726,128], index: 1, kind: input, shape index: {}]   ;;  %s1040_s2 = inlined_call_operand.vmem [shape: f32[1,128], index: 2, kind: input, shape index: {}]   ;;  %s1041_s3 = inlined_call_operand.vmem [shape: f32[128,32], index: 3, kind: input, shape index: {}]   ;;  %s1042_s4 = inlined_call_operand.vmem [shape: f32[1,32], index: 4, kind: input, shape index: {}]   ;;  %s1043_s5 = inlined_call_operand.hbm [shape: f32[8,32], index: 5, kind: output, shape index: {}]  }
   0x1   :  { %v58_v0 = vld [vmem:[%s1039_s1 + $0xf8] sm:$0xff]  ;;  %v57_v2 = vld [vmem:[%s1039_s1 + $0xf0] sm:$0xff]  ;;  %v56_v6 = vld [vmem:[%s1039_s1 + $0xe8] sm:$0xff] }
   0x2   :  { %v42_v1 = vld [vmem:[%s1039_s1 + $0x78] sm:$0xff]  ;;  %464 = vmatprep.subr.mxu0 %v58_v0  ;;  %v41_v4 = vld [vmem:[%s1039_s1 + $0x70] sm:$0xff]  ;;  %v40_v8 = vld [vmem:[%s1039_s1 + $0x68] sm:$0xff] }
   0x3   :  { %v90_v3 = vld [vmem:[%s1039_s1 + $0x1f8] sm:$0xff]  ;;  %465 = vmatpush3.msra.mxu0 %v42_v1  ;;  %v89_v7 = vld [vmem:[%s1039_s1 + $0x1f0] sm:$0xff]  ;;  %v88_v10 = vld [vmem:[%s1039_s1 + $0x1e8] sm:$0xff] }
   0x4   :  { %v74_v5 = vld [vmem:[%s1039_s1 + $0x178] sm:$0xff]  ;;  %499 = vmatprep.subr.mxu1 %v90_v3  ;;  %466 = vmatprep.subr.mxu0 %v57_v2  ;;  %v73_v9 = vld [vmem:[%s1039_s1 + $0x170] sm:$0xff]  ;;  %v55_v11 = vld [vmem:[%s1039_s1 + $0xe0] sm:$0xff] }
   0x5   :  { %500 = vmatpush3.msra.mxu1 %v74_v5  ;;  %467 = vmatpush3.msra.mxu0 %v41_v4  ;;  %v72_v12 = vld [vmem:[%s1039_s1 + $0x168] sm:$0xff]  ;;  %v39_v13 = vld [vmem:[%s1039_s1 + $0x60] sm:$0xff]  ;;  %v54_v15 = vld [vmem:[%s1039_s1 + $0xd8] sm:$0xff] }
   0x6   :  { %501 = vmatprep.subr.mxu1 %v89_v7  ;;  %468 = vmatprep.subr.mxu0 %v56_v6  ;;  %v87_v14 = vld [vmem:[%s1039_s1 + $0x1e0] sm:$0xff]  ;;  %v38_v17 = vld [vmem:[%s1039_s1 + $0x58] sm:$0xff]  ;;  %v53_v19 = vld [vmem:[%s1039_s1 + $0xd0] sm:$0xff] }
   0x7   :  { %502 = vmatpush3.msra.mxu1 %v73_v9  ;;  %469 = vmatpush3.msra.mxu0 %v40_v8  ;;  %v71_v16 = vld [vmem:[%s1039_s1 + $0x160] sm:$0xff]  ;;  %v86_v18 = vld [vmem:[%s1039_s1 + $0x1d8] sm:$0xff]  ;;  %v37_v21 = vld [vmem:[%s1039_s1 + $0x50] sm:$0xff] }
   0x8   :  { %503 = vmatprep.subr.mxu1 %v88_v10  ;;  %470 = vmatprep.subr.mxu0 %v55_v11  ;;  %v70_v20 = vld [vmem:[%s1039_s1 + $0x158] sm:$0xff]  ;;  %v85_v22 = vld [vmem:[%s1039_s1 + $0x1d0] sm:$0xff]  ;;  %v52_v23 = vld [vmem:[%s1039_s1 + $0xc8] sm:$0xff] }
   0x9   :  { %504 = vmatpush3.msra.mxu1 %v72_v12  ;;  %471 = vmatpush3.msra.mxu0 %v39_v13  ;;  %v69_v24 = vld [vmem:[%s1039_s1 + $0x150] sm:$0xff]  ;;  %v36_v25 = vld [vmem:[%s1039_s1 + $0x48] sm:$0xff]  ;;  %v51_v27 = vld [vmem:[%s1039_s1 + $0xc0] sm:$0xff] }
   0xa   :  { %505 = vmatprep.subr.mxu1 %v87_v14  ;;  %472 = vmatprep.subr.mxu0 %v54_v15  ;;  %v84_v26 = vld [vmem:[%s1039_s1 + $0x1c8] sm:$0xff]  ;;  %v35_v29 = vld [vmem:[%s1039_s1 + $0x40] sm:$0xff]  ;;  %v50_v31 = vld [vmem:[%s1039_s1 + $0xb8] sm:$0xff] }
   0xb   :  { %506 = vmatpush3.msra.mxu1 %v71_v16  ;;  %473 = vmatpush3.msra.mxu0 %v38_v17  ;;  %v68_v28 = vld [vmem:[%s1039_s1 + $0x148] sm:$0xff]  ;;  %v83_v30 = vld [vmem:[%s1039_s1 + $0x1c0] sm:$0xff]  ;;  %v34_v33 = vld [vmem:[%s1039_s1 + $0x38] sm:$0xff] }
   0xc   :  { %507 = vmatprep.subr.mxu1 %v86_v18  ;;  %474 = vmatprep.subr.mxu0 %v53_v19  ;;  %v67_v32 = vld [vmem:[%s1039_s1 + $0x140] sm:$0xff]  ;;  %v82_v34 = vld [vmem:[%s1039_s1 + $0x1b8] sm:$0xff]  ;;  %v49_v35 = vld [vmem:[%s1039_s1 + $0xb0] sm:$0xff] }
   0xd   :  { %508 = vmatpush3.msra.mxu1 %v70_v20  ;;  %475 = vmatpush3.msra.mxu0 %v37_v21  ;;  %v66_v36 = vld [vmem:[%s1039_s1 + $0x138] sm:$0xff]  ;;  %v33_v37 = vld [vmem:[%s1039_s1 + $0x30] sm:$0xff]  ;;  %v48_v39 = vld [vmem:[%s1039_s1 + $0xa8] sm:$0xff] }
   0xe   :  { %509 = vmatprep.subr.mxu1 %v85_v22  ;;  %476 = vmatprep.subr.mxu0 %v52_v23  ;;  %v81_v38 = vld [vmem:[%s1039_s1 + $0x1b0] sm:$0xff]  ;;  %v32_v41 = vld [vmem:[%s1039_s1 + $0x28] sm:$0xff]  ;;  %v47_v43 = vld [vmem:[%s1039_s1 + $0xa0] sm:$0xff] }
   0xf   :  { %510 = vmatpush3.msra.mxu1 %v69_v24  ;;  %477 = vmatpush3.msra.mxu0 %v36_v25  ;;  %v65_v40 = vld [vmem:[%s1039_s1 + $0x130] sm:$0xff]  ;;  %v80_v42 = vld [vmem:[%s1039_s1 + $0x1a8] sm:$0xff]  ;;  %v31_v45 = vld [vmem:[%s1039_s1 + $0x20] sm:$0xff] }
  0x10   :  { %511 = vmatprep.subr.mxu1 %v84_v26  ;;  %478 = vmatprep.subr.mxu0 %v51_v27  ;;  %v64_v44 = vld [vmem:[%s1039_s1 + $0x128] sm:$0xff]  ;;  %v79_v46 = vld [vmem:[%s1039_s1 + $0x1a0] sm:$0xff]  ;;  %v46_v47 = vld [vmem:[%s1039_s1 + $0x98] sm:$0xff] }
  0x11   :  { %512 = vmatpush3.msra.mxu1 %v68_v28  ;;  %479 = vmatpush3.msra.mxu0 %v35_v29  ;;  %v63_v48 = vld [vmem:[%s1039_s1 + $0x120] sm:$0xff]  ;;  %v30_v49 = vld [vmem:[%s1039_s1 + $0x18] sm:$0xff]  ;;  %v45_v51 = vld [vmem:[%s1039_s1 + $0x90] sm:$0xff] }
  0x12   :  { %513 = vmatprep.subr.mxu1 %v83_v30  ;;  %480 = vmatprep.subr.mxu0 %v50_v31  ;;  %v78_v50 = vld [vmem:[%s1039_s1 + $0x198] sm:$0xff]  ;;  %v29_v53 = vld [vmem:[%s1039_s1 + $0x10] sm:$0xff]  ;;  %v44_v55 = vld [vmem:[%s1039_s1 + $0x88] sm:$0xff] }
  0x13   :  { %514 = vmatpush3.msra.mxu1 %v67_v32  ;;  %481 = vmatpush3.msra.mxu0 %v34_v33  ;;  %v62_v52 = vld [vmem:[%s1039_s1 + $0x118] sm:$0xff]  ;;  %v77_v54 = vld [vmem:[%s1039_s1 + $0x190] sm:$0xff]  ;;  %v28_v57 = vld [vmem:[%s1039_s1 + $0x8] sm:$0xff] }
  0x14   :  { %515 = vmatprep.subr.mxu1 %v82_v34  ;;  %482 = vmatprep.subr.mxu0 %v49_v35  ;;  %v61_v56 = vld [vmem:[%s1039_s1 + $0x110] sm:$0xff]  ;;  %v76_v58 = vld [vmem:[%s1039_s1 + $0x188] sm:$0xff]  ;;  %v43_v59 = vld [vmem:[%s1039_s1 + $0x80] sm:$0xff] }
  0x15   :  { %516 = vmatpush3.msra.mxu1 %v66_v36  ;;  %483 = vmatpush3.msra.mxu0 %v33_v37  ;;  %v22_v60 = vld [vmem:[%s1038_s0 + $0x8] sm:$0xff]  ;;  %v27_v61 = vld [vmem:[%s1039_s1] sm:$0xff]  ;;  %v24_v2 = vld [vmem:[%s1038_s0 + $0x18] sm:$0xff] }
  0x16   :  { %517 = vmatprep.subr.mxu1 %v81_v38  ;;  %484 = vmatprep.subr.mxu0 %v48_v39  ;;  %v60_v62 = vld [vmem:[%s1039_s1 + $0x108] sm:$0xff]  ;;  %v21_v63 = vld [vmem:[%s1038_s0] sm:$0xff]  ;;  %v106_v3 = vld [vmem:[%s1039_s1 + $0x278] sm:$0xff] }
  0x17   :  { %518 = vmatpush3.msra.mxu1 %v65_v40  ;;  %485 = vmatpush3.msra.mxu0 %v32_v41  ;;  %v75_v0 = vld [vmem:[%s1039_s1 + $0x180] sm:$0xff] }
  0x18   :  { %519 = vmatprep.subr.mxu1 %v80_v42  ;;  %486 = vmatprep.subr.mxu0 %v47_v43  ;;  %v59_v1 = vld [vmem:[%s1039_s1 + $0x100] sm:$0xff] }
  0x19   :  { %520 = vmatpush3.msra.mxu1 %v64_v44  ;;  %487 = vmatpush3.msra.mxu0 %v31_v45 }
  0x1a   :  { %521 = vmatprep.subr.mxu1 %v79_v46  ;;  %488 = vmatprep.subr.mxu0 %v46_v47 }
  0x1b   :  { %522 = vmatpush3.msra.mxu1 %v63_v48  ;;  %489 = vmatpush3.msra.mxu0 %v30_v49 }
  0x1c   :  { %523 = vmatprep.subr.mxu1 %v78_v50  ;;  %490 = vmatprep.subr.mxu0 %v45_v51 }
  0x1d   :  { %524 = vmatpush3.msra.mxu1 %v62_v52  ;;  %491 = vmatpush3.msra.mxu0 %v29_v53 }
  0x1e   :  { %525 = vmatprep.subr.mxu1 %v77_v54  ;;  %492 = vmatprep.subr.mxu0 %v44_v55 }
  0x1f   :  { %526 = vmatpush3.msra.mxu1 %v61_v56  ;;  %493 = vmatpush3.msra.mxu0 %v28_v57 }
  0x20   :  { %527 = vmatprep.subr.mxu1 %v76_v58  ;;  %494 = vmatprep.subr.mxu0 %v43_v59 }
  0x21   :  { %197 = vmatprep.mubr.f32.mxu0 %v22_v60  ;;  %495 = vmatpush3.msra.mxu0 %v27_v61 }
  0x22   :  { %528 = vmatpush3.msra.mxu1 %v60_v62 }
  0x23   :  { %10 = vsyncpa [#allocation3], 0  ;;  %198 = vmatmul.mubr.f32.vlgmr.msra.gmra.mxu0 %v21_v63  ;;  %529 = vmatprep.subr.mxu1 %v75_v0  ;;  %v23_v4 = vld [vmem:[%s1038_s0 + $0x10] sm:$0xff]  ;;  %v613_v5 = vmov 0.0   ;;  %v26_v7 = vld [vmem:[%s1038_s0 + $0x28] sm:$0xff]  ;;  %vm125_vm0 = vcmask 703488  }
  0x24   :  { %273 = vmatprep.subr.mxu0 %v613_v5  ;;  %530 = vmatpush3.msra.mxu1 %v59_v1  ;;  %v105_v6 = vld [vmem:[%s1039_s1 + $0x270] sm:$0xff]  ;;  %v104_v8 = vld [vmem:[%s1039_s1 + $0x268] sm:$0xff]  ;;  %v103_v9 = vld [vmem:[%s1039_s1 + $0x260] sm:$0xff]  ;;  %vm129_vm1 = vcmask 1045504   ;;  %vm614_vm2 = vmmov 0   ;;  %vm438_vm3 = vcmask 261120  }
  0x25   :  { %267 = vmatprep.mubr.f32.mxu1 %v24_v2  ;;  %274 = vmatpush1.msra.mxu0 %v106_v3  ;;  %v102_v10 = vld [vmem:[%s1039_s1 + $0x258] sm:$0xff]  ;;  %v101_v11 = vld [vmem:[%s1039_s1 + $0x250] sm:$0xff]  ;;  %v100_v12 = vld [vmem:[%s1039_s1 + $0x248] sm:$0xff] }
  0x26   :  { %268 = vmatmul.mubr.f32.vlgmr.msra.gmra.mxu1 %v23_v4  ;;  %275 = vmatprep.subr.mxu0 %v613_v5  ;;  %v99_v13 = vld [vmem:[%s1039_s1 + $0x240] sm:$0xff]  ;;  %v98_v14 = vld [vmem:[%s1039_s1 + $0x238] sm:$0xff]  ;;  %v97_v15 = vld [vmem:[%s1039_s1 + $0x230] sm:$0xff] }
  0x27   :  { %276 = vmatpush1.msra.mxu0 %v105_v6  ;;  %462 = vmatprep.mubr.msk.f32.mxu0 %vm125_vm0, %v26_v7  ;;  %v96_v16 = vld [vmem:[%s1039_s1 + $0x228] sm:$0xff]  ;;  %v95_v17 = vld [vmem:[%s1039_s1 + $0x220] sm:$0xff]  ;;  %v94_v18 = vld [vmem:[%s1039_s1 + $0x218] sm:$0xff] }
  0x28   :  { %277 = vmatprep.subr.mxu0 %v613_v5  ;;  %551 = vmatprep.subr.mxu1 %v613_v5  ;;  %v93_v19 = vld [vmem:[%s1039_s1 + $0x210] sm:$0xff]  ;;  %v92_v20 = vld [vmem:[%s1039_s1 + $0x208] sm:$0xff]  ;;  %v91_v21 = vld [vmem:[%s1039_s1 + $0x200] sm:$0xff] }
  0x29   :  { %278 = vmatpush1.msra.mxu0 %v104_v8  ;;  %v117_v22 = vld [vmem:[%s1039_s1 + $0x2d0] sm:$0x3f]  ;;  %v116_v23 = vld [vmem:[%s1039_s1 + $0x2c8] sm:$0xff]  ;;  %v115_v24 = vld [vmem:[%s1039_s1 + $0x2c0] sm:$0xff]  ;;  %583 = vmatprep.mubr.msk.f32.mxu1 %vm614_vm2, %v613_v5 }
  0x2a   :  { %279 = vmatprep.subr.mxu0 %v613_v5  ;;  %v114_v25 = vld [vmem:[%s1039_s1 + $0x2b8] sm:$0xff]  ;;  %v113_v26 = vld [vmem:[%s1039_s1 + $0x2b0] sm:$0xff]  ;;  %v112_v27 = vld [vmem:[%s1039_s1 + $0x2a8] sm:$0xff] }
  0x2b   :  { %280 = vmatpush1.msra.mxu0 %v103_v9  ;;  %v111_v28 = vld [vmem:[%s1039_s1 + $0x2a0] sm:$0xff]  ;;  %v110_v29 = vld [vmem:[%s1039_s1 + $0x298] sm:$0xff]  ;;  %v109_v30 = vld [vmem:[%s1039_s1 + $0x290] sm:$0xff] }
  0x2c   :  { %281 = vmatprep.subr.mxu0 %v613_v5  ;;  %v108_v31 = vld [vmem:[%s1039_s1 + $0x288] sm:$0xff]  ;;  %v107_v32 = vld [vmem:[%s1039_s1 + $0x280] sm:$0xff]  ;;  %v359_v34 = vld [vmem:[%s1041_s3 + $0x78] sm:$0xff] }
  0x2d   :  { %282 = vmatpush1.msra.mxu0 %v102_v10  ;;  %v25_v33 = vld [vmem:[%s1038_s0 + $0x20] sm:$0xff]  ;;  %v358_v35 = vld [vmem:[%s1041_s3 + $0x70] sm:$0xff]  ;;  %552 = vmatpush3.msra.mxu1 %v359_v34  ;;  %v357_v36 = vld [vmem:[%s1041_s3 + $0x68] sm:$0xff] }
  0x2e   :  { %283 = vmatprep.subr.mxu0 %v613_v5  ;;  %553 = vmatprep.subr.mxu1 %v613_v5  ;;  %v356_v37 = vld [vmem:[%s1041_s3 + $0x60] sm:$0xff]  ;;  %v355_v38 = vld [vmem:[%s1041_s3 + $0x58] sm:$0xff]  ;;  %v354_v39 = vld [vmem:[%s1041_s3 + $0x50] sm:$0xff] }
  0x2f   :  { %284 = vmatpush1.msra.mxu0 %v101_v11  ;;  %554 = vmatpush3.msra.mxu1 %v358_v35  ;;  %v353_v40 = vld [vmem:[%s1041_s3 + $0x48] sm:$0xff]  ;;  %v352_v41 = vld [vmem:[%s1041_s3 + $0x40] sm:$0xff]  ;;  %v351_v42 = vld [vmem:[%s1041_s3 + $0x38] sm:$0xff] }
  0x30   :  { %285 = vmatprep.subr.mxu0 %v613_v5  ;;  %555 = vmatprep.subr.mxu1 %v613_v5  ;;  %v350_v43 = vld [vmem:[%s1041_s3 + $0x30] sm:$0xff]  ;;  %v349_v44 = vld [vmem:[%s1041_s3 + $0x28] sm:$0xff]  ;;  %v348_v45 = vld [vmem:[%s1041_s3 + $0x20] sm:$0xff] }
  0x31   :  { %286 = vmatpush1.msra.mxu0 %v100_v12  ;;  %556 = vmatpush3.msra.mxu1 %v357_v36  ;;  %v347_v46 = vld [vmem:[%s1041_s3 + $0x18] sm:$0xff]  ;;  %v346_v47 = vld [vmem:[%s1041_s3 + $0x10] sm:$0xff]  ;;  %v345_v48 = vld [vmem:[%s1041_s3 + $0x8] sm:$0xff] }
  0x32   :  { %287 = vmatprep.subr.mxu0 %v613_v5  ;;  %557 = vmatprep.subr.mxu1 %v613_v5  ;;  %v344_v49 = vld [vmem:[%s1041_s3] sm:$0xff] }
  0x33   :  { %288 = vmatpush1.msra.mxu0 %v99_v13  ;;  %558 = vmatpush3.msra.mxu1 %v356_v37  ;;  %v460_v54 = vld [vmem:[%s1040_s2] ss:$0 sm:$0xff]  ;;  %s615_s2 = smov [#allocation2]  }
  0x34   :  { %289 = vmatprep.subr.mxu0 %v613_v5  ;;  %559 = vmatprep.subr.mxu1 %v613_v5  ;;  %v463_v63 = vld [vmem:[%s1042_s4] ss:$0 sm:$0xff]  ;;  %s452_s18 = sshll.u32 %s615_s2, 4  ;;  %s453_s18 = int_to_ptr.vmem [resolvable:$true] %s452_s18 }
  0x35   :  { %290 = vmatpush1.msra.mxu0 %v98_v14  ;;  %560 = vmatpush3.msra.mxu1 %v355_v38  ;;  %s591_s19 = scalar_lea.vmem %s453_s18, 128  ;;  %p596_p1 = scmp.lt.s32.totalorder %s453_s18, %s453_s18 }
  0x36   :  { %291 = vmatprep.subr.mxu0 %v613_v5  ;;  %561 = vmatprep.subr.mxu1 %v613_v5  ;;  %p592_p0 = scmp.ne.s32.totalorder %s453_s18, %s591_s19  ;;  %p597_p2 = scmp.lt.s32.totalorder %s591_s19, %s591_s19 }
  0x37   :  { %292 = vmatpush1.msra.mxu0 %v97_v15  ;;  %562 = vmatpush3.msra.mxu1 %v354_v39 }
  0x38   :  { %293 = vmatprep.subr.mxu0 %v613_v5  ;;  %563 = vmatprep.subr.mxu1 %v613_v5  ;;  %p598_p3 = por %p597_p2, %p596_p1 }
  0x39   :  { %294 = vmatpush1.msra.mxu0 %v96_v16  ;;  %564 = vmatpush3.msra.mxu1 %v353_v40 }
  0x3a   :  { %295 = vmatprep.subr.mxu0 %v613_v5  ;;  %565 = vmatprep.subr.mxu1 %v613_v5  ;;  %p599_p4 = pnand %p598_p3, %p592_p0 }
  0x3b   :  { %296 = vmatpush1.msra.mxu0 %v95_v17  ;;  %566 = vmatpush3.msra.mxu1 %v352_v41 }
  0x3c   :  { %297 = vmatprep.subr.mxu0 %v613_v5  ;;  %567 = vmatprep.subr.mxu1 %v613_v5 }
  0x3d   :  { %298 = vmatpush1.msra.mxu0 %v94_v18  ;;  %568 = vmatpush3.msra.mxu1 %v351_v42 }
  0x3e   :  { %299 = vmatprep.subr.mxu0 %v613_v5  ;;  %569 = vmatprep.subr.mxu1 %v613_v5 }
  0x3f   :  { %300 = vmatpush1.msra.mxu0 %v93_v19  ;;  %570 = vmatpush3.msra.mxu1 %v350_v43 }
  0x40   :  { %301 = vmatprep.subr.mxu0 %v613_v5  ;;  %571 = vmatprep.subr.mxu1 %v613_v5 }
  0x41   :  { %302 = vmatpush1.msra.mxu0 %v92_v20  ;;  %572 = vmatpush3.msra.mxu1 %v349_v44 }
  0x42   :  { %303 = vmatprep.subr.mxu0 %v613_v5  ;;  %573 = vmatprep.subr.mxu1 %v613_v5 }
  0x43   :  { %304 = vmatpush1.msra.mxu0 %v91_v21  ;;  %574 = vmatpush3.msra.mxu1 %v348_v45 }
  0x44   :  { %315 = vmatprep.subr.mxu0 %v613_v5  ;;  %575 = vmatprep.subr.mxu1 %v613_v5 }
  0x45   :  { %461 = vmatpush2.msk.msra.mxu0 %vm129_vm1, %v117_v22  ;;  %576 = vmatpush3.msra.mxu1 %v347_v46 }
  0x46   :  { %317 = vmatprep.subr.mxu0 %v613_v5  ;;  %577 = vmatprep.subr.mxu1 %v613_v5 }
  0x47   :  { %318 = vmatpush2.msra.mxu0 %v116_v23  ;;  %578 = vmatpush3.msra.mxu1 %v346_v47 }
  0x48   :  { %319 = vmatprep.subr.mxu0 %v613_v5  ;;  %579 = vmatprep.subr.mxu1 %v613_v5 }
  0x49   :  { %320 = vmatpush2.msra.mxu0 %v115_v24  ;;  %580 = vmatpush3.msra.mxu1 %v345_v48 }
  0x4a   :  { %321 = vmatprep.subr.mxu0 %v613_v5  ;;  %581 = vmatprep.subr.mxu1 %v613_v5 }
  0x4b   :  { %322 = vmatpush2.msra.mxu0 %v114_v25  ;;  %582 = vmatpush3.msra.mxu1 %v344_v49 }
  0x4c   :  { %323 = vmatprep.subr.mxu0 %v613_v5 }
  0x4d   :  { %324 = vmatpush2.msra.mxu0 %v113_v26 }
  0x4e   :  { %325 = vmatprep.subr.mxu0 %v613_v5 }
  0x4f   :  { %326 = vmatpush2.msra.mxu0 %v112_v27 }
  0x50   :  { %327 = vmatprep.subr.mxu0 %v613_v5 }
  0x51   :  { %328 = vmatpush2.msra.mxu0 %v111_v28 }
  0x52   :  { %329 = vmatprep.subr.mxu0 %v613_v5 }
  0x53   :  { %330 = vmatpush2.msra.mxu0 %v110_v29 }
  0x54   :  { %331 = vmatprep.subr.mxu0 %v613_v5 }
  0x55   :  { %332 = vmatpush2.msra.mxu0 %v109_v30 }
  0x56   :  { %333 = vmatprep.subr.mxu0 %v613_v5 }
  0x57   :  { %334 = vmatpush2.msra.mxu0 %v108_v31 }
  0x58   :  { %335 = vmatprep.subr.mxu0 %v613_v5 }
  0x59   :  { %336 = vmatpush2.msra.mxu0 %v107_v32 }
  0x5a   :  { %338 = vmatmul.mubr.f32.vlgmr.msra.gmra.mxu0 %v25_v33 }
  0xe3   :  { %v496_v50 = vpop.f32.mrf.mxu0 }
  0xe5   :  { %v497_v51 = vpop.f32.mrf.mxu0 }
  0xe6   :  { %v531_v52 = vpop.f32.mrf.mxu1  ;;  %v498_v53 = vadd.f32 %v497_v51, %v496_v50 }
  0xe8   :  { %v532_v55 = vpop.f32.mrf.mxu1  ;;  %v200_v56 = vadd.f32 %v498_v53, %v460_v54 }
  0xe9   :  { %v533_v57 = vadd.f32 %v532_v55, %v531_v52 }
  0xeb   :  { %v270_v58 = vadd.f32 %v533_v57, %v200_v56 }
 0x11a   :  { %v339_v59 = vpop.f32.mrf.mxu0 }
 0x11b   :  { %v340_v60 = vadd.f32 %v339_v59, %v270_v58 }
 0x11c   :  { %v341_v61 = vpop.f32.mrf.mxu0 }
 0x11d   :  { %v343_v62 = vmax.f32 %v340_v60, 0.0 }
 0x11f   :  { %584 = vmatmul.mubr.f32.vlgmr.msra.gmra.mxu1 %v343_v62 }
 0x1df   :  { %v433_v0 = vpop.f32.mrf.mxu1 }
 0x1e0   :  { %v434_v1 = vadd.f32 %v463_v63, %v433_v0 }
 0x1e1   :  { %v585_v2 = vpop.f32.mrf.mxu1 }
 0x1e2   :  { %v437_v3 = vmul.f32 %v434_v1, %v434_v1 }
 0x1e4   :  { %v439_v4 = vsel %vm438_vm3, %v437_v3, 0.0 }
 0x1e5   :  { %440 = vadd.xlane.f32.xlu0 %v439_v4 }
 0x26e   :  { %v441_v5 = vpop.xlane.xlu0 %440 }
 0x26f   :  { %v442_v6 = vmax.f32 %v441_v5, 1e-24 }
 0x271   :  { %589 = vrsqrt.f32 %v442_v6 }
 0x27e   :  { %v590_v7 = vpop.eup %589 }
 0x27f   :  { %v444_v8 = vmul.f32 %v590_v7, %v434_v1 }
 0x281   :  { %445 = vst.msk [vmem:[#allocation2] sm:$0xff] %vm438_vm3, %v444_v8 }
 0x282   :  { %602 = shalt.err (!%p599_p4)
}
 0x283   :  { %455 = dma.vmem_to_hbm [thread:$0]  %s453_s18, 128, %s1043_s5, [#allocation3]  }
 0x284   :  { %611 = dma.done.wait [#allocation3], 128  }
 0x285   :  { %612 = vsyncadd [#allocation3], 4294967168 }
 0x286   :  { %459 = vsyncpa [#allocation3], 1 }

</bundles_post_ra>
